<compile_context>
chip_gen: v5e
topology: v5e:2x2
jax: 0.10.0
libtpu: 0.0.40
codegen_flags: <defaults>
</compile_context>

<pallas_src>
import functools

import jax
import jax.numpy as jnp
from jax import lax
from jax.experimental import pallas as pl
from jax.experimental.pallas import tpu as pltpu

_LANES = 128
_ROW_CAP = 1024  # max rows per block (guards huge-batch VMEM blowup)


def _tpu_vmem_capacity_bytes() -> int:
    try:
        return int(pltpu.get_tpu_info().vmem_capacity_bytes)
    except Exception:
        return 64 * 1024 * 1024  # conservative (v7x-sized)


def _tensorcores_per_device() -> int:
    """Best-effort TC count; default 1 (no split) when unsure."""
    try:
        info = pltpu.get_tpu_info()
        for name in ("num_cores", "core_count", "num_tensorcores",
                     "tensor_cores_per_chip", "cores_per_chip"):
            v = getattr(info, name, None)
            if isinstance(v, int) and v >= 1:
                return v
    except Exception:
        pass
    try:
        kind = jax.devices()[0].device_kind.lower()
    except Exception:
        return 1
    if any(s in kind for s in ("v5e", "v5 lite", "v5lite", "v6e", "v6 lite", "v6lite")):
        return 1
    if any(s in kind for s in ("v4", "v5p", "v7", "7x")):
        return 2
    return 1


def _sum_all_kernel(x_ref, o_ref, acc_ref, *, steps, tk, c_total, ragged):
    j = pl.program_id(2)  # reduction ('arbitrary') axis

    @pl.when(j == 0)
    def _():
        acc_ref[...] = jnp.zeros_like(acc_ref)

    if not ragged:
        # Steady state: pure full-vreg VPU add, no masking, no XLU.
        acc_ref[...] += x_ref[...].astype(jnp.float32)
    else:
        col0 = (pl.program_id(0) * steps + j) * tk

        @pl.when(col0 + tk <= c_total)  # interior block: unmasked fast path
        def _():
            acc_ref[...] += x_ref[...].astype(jnp.float32)

        @pl.when(col0 + tk > c_total)  # ragged tail / phantom block
        def _():
            x = x_ref[...].astype(jnp.float32)
            col_idx = lax.broadcasted_iota(jnp.int32, x.shape, dimension=1)
            acc_ref[...] += jnp.where(col0 + col_idx < c_total, x, 0.0)

    @pl.when(j == steps - 1)
    def _():
        # The only cross-lane (XLU) reduce + narrow store, once per split.
        o_ref[...] = jnp.sum(acc_ref[...], axis=1, keepdims=True)[None]


def sum_all(x: jax.Array, *, vmem_budget_bytes: int | None = None,
            max_block_cols: int | None = None) -> jax.Array:
    """Equivalent of torch `input.sum(dim=[1, 2, 3])` for an NCHW tensor."""
    n = x.shape[0]
    k = 1
    for d in x.shape[1:]:
        k *= d
    if n == 0 or k == 0:
        return jnp.zeros((n,), x.dtype)

    itemsize = jnp.dtype(x.dtype).itemsize
    sub = {4: 8, 2: 16, 1: 32}.get(itemsize, 8)  # dtype-native sublane pack

    # Fold a power-of-two factor of k into the row dim (free contiguous
    # reshape, NO pad / NO copy) so rows >= native sublane count.
    need = max(1, -(-sub // n))
    g = 1
    while g < need and k % (g * 2) == 0 and (k // (g * 2)) >= _LANES:
        g *= 2
    rows, cols = n * g, k // g
    flat = x.reshape(rows, cols)  # contiguous -> free view

    # ---- tiling from a VMEM byte budget (2 input buffers + f32 acc) -------
    vmem_cap = _tpu_vmem_capacity_bytes()
    if vmem_budget_bytes is None:
        vmem_budget_bytes = min(48 * 1024 * 1024, int(vmem_cap * 0.70))
    vmem_limit = int(min(vmem_cap - 8 * 1024 * 1024,
                         vmem_budget_bytes + 12 * 1024 * 1024))

    bn = rows if rows <= _ROW_CAP else _ROW_CAP  # _ROW_CAP is a multiple of 32
    n_row_blocks = pl.cdiv(rows, bn)

    per_col_bytes = bn * (2 * itemsize + 4)  # 2x input (double-buffered) + f32 acc
    tk = max(_LANES, (vmem_budget_bytes // per_col_bytes) // _LANES * _LANES)
    if max_block_cols is not None:
        tk = max(_LANES, min(tk, (max_block_cols // _LANES) * _LANES))
    if cols <= tk:
        tk = cols  # single full-extent column block (any width is legal)
    ncb = pl.cdiv(cols, tk)  # number of column blocks

    # Split the reduction range across TensorCores only if there are >1.
    cores = _tensorcores_per_device()
    num_splits = max(1, min(cores, ncb))
    steps = pl.cdiv(ncb, num_splits)
    ragged = (cols % tk != 0) or (num_splits * steps != ncb)

    kernel = functools.partial(_sum_all_kernel, steps=steps, tk=tk,
                               c_total=cols, ragged=ragged)

    def in_map(s, rb, j):
        # Clamp phantom trailing blocks (they are fully masked in-kernel).
        return (rb, jnp.minimum(s * steps + j, ncb - 1))

    cost = pl.CostEstimate(flops=n * k, transcendentals=0,
                           bytes_accessed=n * k * itemsize + num_splits * rows * 4)

    partials = pl.pallas_call(
        kernel,
        out_shape=jax.ShapeDtypeStruct((num_splits, rows, 1), jnp.float32),
        grid_spec=pltpu.PrefetchScalarGridSpec(
            num_scalar_prefetch=0,
            grid=(num_splits, n_row_blocks, steps),
            in_specs=[pl.BlockSpec((bn, tk), in_map)],
            out_specs=pl.BlockSpec((1, bn, 1), lambda s, rb, j: (s, rb, 0)),
            scratch_shapes=[pltpu.VMEM((bn, tk), jnp.float32)],
        ),
        compiler_params=pltpu.CompilerParams(
            dimension_semantics=("parallel", "parallel", "arbitrary"),
            vmem_limit_bytes=vmem_limit,
        ),
        cost_estimate=cost,
    )(flat)

    # Tiny finalization in JAX: add splits, fold the g row-groups per batch.
    per_row = jnp.sum(partials[:, :, 0], axis=0)          # (rows,)
    out = per_row.reshape(n, g).sum(axis=1)               # (n,)
    return out.astype(x.dtype)


if __name__ == "__main__":
    key = jax.random.PRNGKey(0)

    # Primary check: small NCHW input consistent with the module's forward.
    x = jax.random.normal(key, (2, 4, 16, 16), dtype=jnp.float32)
    y = sum_all(x)
    jax.block_until_ready(y)
    y_ref = jnp.sum(x, axis=(1, 2, 3))
    assert y.shape == (2,)
    assert jnp.allclose(y, y_ref, rtol=1e-5, atol=1e-4)

    # Multi-step accumulation path (forced small column blocks).
    x2 = jax.random.normal(key, (2, 8, 32, 64), dtype=jnp.float32)
    y2 = sum_all(x2, max_block_cols=512)
    assert jnp.allclose(y2, jnp.sum(x2, axis=(1, 2, 3)), rtol=1e-5, atol=5e-3)

    # Ragged last column block + (possible) phantom split steps.
    x3 = jax.random.normal(key, (2, 17, 32, 32), dtype=jnp.float32)
    y3 = sum_all(x3, max_block_cols=512)
    assert jnp.allclose(y3, jnp.sum(x3, axis=(1, 2, 3)), rtol=1e-5, atol=5e-3)

    # Non-128-aligned (odd) reduction size: no pad, in-kernel lane masking.
    x4 = jax.random.normal(key, (2, 3, 5, 7), dtype=jnp.float32)
    y4 = sum_all(x4)
    assert jnp.allclose(y4, jnp.sum(x4, axis=(1, 2, 3)), rtol=1e-5, atol=1e-4)

    # bf16 path (dtype-aware sublane packing, f32 accumulation).
    x5 = jax.random.normal(key, (2, 4, 16, 16), dtype=jnp.float32).astype(jnp.bfloat16)
    y5 = sum_all(x5).astype(jnp.float32)
    y5_ref = jnp.sum(x5.astype(jnp.float32), axis=(1, 2, 3))
    assert jnp.allclose(y5, y5_ref, rtol=2e-2, atol=0.5)

    print("KERNEL_OK")
</pallas_src>

<mosaic_0001>
module attributes {stable_mosaic.version = 11 : i64} {
  func.func @_sum_all_kernel(%arg0: i32, %arg1: i32, %arg2: i32, %arg3: memref<8x256xf32, #tpu.memory_space<vmem>>, %arg4: memref<1x8x1xf32, #tpu.memory_space<vmem>>, %arg5: memref<8x256xf32, #tpu.memory_space<vmem>>) attributes {dimension_semantics = [#tpu.dimension_semantics<parallel>, #tpu.dimension_semantics<parallel>, #tpu.dimension_semantics<arbitrary>], iteration_bounds = array<i64: 1, 1, 1>, scalar_prefetch = 0 : i64, scratch_operands = 1 : i64, tpu.core_type = #tpu.core_type<tc>, window_params = [{transform_indices = @transform_0, window_bounds = array<i64: 8, 256>}, {transform_indices = @transform_1, window_bounds = array<i64: 1, 8, 1>}]} {
    %c0_i32 = arith.constant 0 : i32
    %0 = arith.cmpi eq, %arg2, %c0_i32 : i32
    %1 = arith.extui %0 : i1 to i32
    %c0_i32_0 = arith.constant 0 : i32
    %2 = arith.cmpi ne, %1, %c0_i32_0 : i32
    scf.if %2 {
      %cst = arith.constant 0.000000e+00 : f32
      %10 = vector.broadcast %cst : f32 to vector<8x256xf32>
      %c0_8 = arith.constant 0 : index
      %c0_9 = arith.constant 0 : index
      %11 = vector.load %arg5[%c0_8, %c0_9] : memref<8x256xf32, #tpu.memory_space<vmem>>, vector<8x256xf32>
      tpu.vector_store %arg5[%c0_8, %c0_9], %10 {strides = array<i32>} : memref<8x256xf32, #tpu.memory_space<vmem>>, vector<8x256xf32>,
    } else {
    }
    %c0 = arith.constant 0 : index
    %c0_1 = arith.constant 0 : index
    %3 = vector.load %arg5[%c0, %c0_1] : memref<8x256xf32, #tpu.memory_space<vmem>>, vector<8x256xf32>
    %c0_2 = arith.constant 0 : index
    %c0_3 = arith.constant 0 : index
    %4 = vector.load %arg3[%c0_2, %c0_3] : memref<8x256xf32, #tpu.memory_space<vmem>>, vector<8x256xf32>
    %5 = arith.addf %3, %4 : vector<8x256xf32>
    %c0_4 = arith.constant 0 : index
    %c0_5 = arith.constant 0 : index
    %6 = vector.load %arg5[%c0_4, %c0_5] : memref<8x256xf32, #tpu.memory_space<vmem>>, vector<8x256xf32>
    tpu.vector_store %arg5[%c0_4, %c0_5], %5 {strides = array<i32>} : memref<8x256xf32, #tpu.memory_space<vmem>>, vector<8x256xf32>,
    %c0_i32_6 = arith.constant 0 : i32
    %7 = arith.cmpi eq, %arg2, %c0_i32_6 : i32
    %8 = arith.extui %7 : i1 to i32
    %c0_i32_7 = arith.constant 0 : i32
    %9 = arith.cmpi ne, %8, %c0_i32_7 : i32
    scf.if %9 {
      %c0_8 = arith.constant 0 : index
      %c0_9 = arith.constant 0 : index
      %10 = vector.load %arg5[%c0_8, %c0_9] : memref<8x256xf32, #tpu.memory_space<vmem>>, vector<8x256xf32>
      %cst = arith.constant dense<0.000000e+00> : vector<8xf32>
      %11 = vector.multi_reduction <add>, %10, %cst [1] : vector<8x256xf32> to vector<8xf32>
      %12 = vector.shape_cast %11 : vector<8xf32> to vector<8x1xf32>
      %13 = vector.shape_cast %12 : vector<8x1xf32> to vector<1x8x1xf32>
      %c0_10 = arith.constant 0 : index
      %c0_11 = arith.constant 0 : index
      %c0_12 = arith.constant 0 : index
      %14 = vector.load %arg4[%c0_10, %c0_11, %c0_12] : memref<1x8x1xf32, #tpu.memory_space<vmem>>, vector<1x8x1xf32>
      tpu.vector_store %arg4[%c0_10, %c0_11, %c0_12], %13 {strides = array<i32>} : memref<1x8x1xf32, #tpu.memory_space<vmem>>, vector<1x8x1xf32>,
    } else {
    }
    return
  }
  func.func @transform_0(%arg0: i32, %arg1: i32, %arg2: i32) -> (i32, i32) {
    %c1_i32 = arith.constant 1 : i32
    %0 = arith.muli %arg0, %c1_i32 : i32
    %1 = arith.addi %0, %arg2 : i32
    %c0_i32 = arith.constant 0 : i32
    %2 = arith.minsi %1, %c0_i32 : i32
    %c0_i32_0 = arith.constant 0 : i32
    return %arg1, %2 : i32, i32
  }
  func.func @transform_1(%arg0: i32, %arg1: i32, %arg2: i32) -> (i32, i32, i32) {
    %c0_i32 = arith.constant 0 : i32
    %c0_i32_0 = arith.constant 0 : i32
    return %arg0, %arg1, %c0_i32 : i32, i32, i32
  }
}

</mosaic_0001>

<bundles_post_ra>
// kernel: tpu_custom_call.1
= control target key start
LH: loop header
LB: loop body
LE: loop exit
PB: predicated region body
PF: predicated region fallthrough
CT: control target
= control target key end

     0   :  { %6 = vsyncpa [#allocation4], 0  ;;  %s90_s9 = smov [#allocation3]   ;;  %s107_s0 = inlined_call_operand.hbm [shape: f32[8,256], index: 0, kind: input, shape index: {}]   ;;  %s108_s1 = inlined_call_operand.vmem [shape: f32[1,8,1], index: 1, kind: output, shape index: {}]  }
   0x1   :  { %s18_s8 = sshll.u32 %s107_s0, 4  ;;  %s20_s10 = sshll.u32 %s90_s9, 4  ;;  %s19_s8 = int_to_ptr.hbm [resolvable:$true] %s18_s8  ;;  %s21_s10 = int_to_ptr.vmem [resolvable:$true] %s20_s10 }
   0x2   :  { %23 = dma.hbm_to_vmem [thread:$0]  %s19_s8, 256, %s21_s10, [#allocation4]  }
   0x3   :  { %88 = dma.done.wait [#allocation4], 256  }
   0x4   :  { %89 = vsyncadd [#allocation4], 4294967040  ;;  %v40_v0 = vld [vmem:[#allocation3] sm:$0xff]  ;;  %v41_v1 = vld [vmem:[#allocation3 + $0x8] sm:$0xff]  ;;  %vm54_vm0 = vcmask 7168  }
   0x5   :  { %v51_v2 = vadd.f32 %v41_v1, %v40_v0 }
   0x7   :  { %52 = vadd.xlane.f32.xlu0 %v51_v2 }
  0x7a   :  { %v53_v3 = vpop.xlane.xlu0 %52 }
  0x7b   :  { %55 = vst.msk [vmem:[%s108_s1] sm:$0xff] %vm54_vm0, %v53_v3 }
  0x7c   :  { %60 = vsyncpa [#allocation4], 1 }

</bundles_post_ra>
